<compile_context>
chip_gen: v7x
topology: tpu7x:2x2x1
jax: 0.10.0
libtpu: 0.0.40
codegen_flags: <defaults>
</compile_context>

<pallas_src>
import numpy as np
import jax
import jax.numpy as jnp
from jax.experimental import pallas as pl
from jax.experimental.pallas import tpu as pltpu

MAX_SIZE = 1000
SCALES = (600,)
PIXEL_MEANS = np.array([[[102.9801, 115.9465, 122.7717]]], dtype=np.float32)


# ----------------------------------------------------------------------------
# Preprocessing (glue, plain JAX/numpy) — mirrors _get_image_blob / get_blobs.
# ----------------------------------------------------------------------------
def get_blobs(im, scales=SCALES, max_size=MAX_SIZE):
    """im: HWC BGR float image. Returns (blob (1,Hs,Ws,3) f32, im_scale_factors)."""
    im_orig = np.asarray(im, dtype=np.float32) - PIXEL_MEANS
    h, w = im_orig.shape[0], im_orig.shape[1]
    im_size_min = float(min(h, w))
    im_size_max = float(max(h, w))
    processed, factors = [], []
    for target_size in scales:
        im_scale = float(target_size) / im_size_min
        if np.round(im_scale * im_size_max) > max_size:
            im_scale = float(max_size) / im_size_max
        nh, nw = int(round(h * im_scale)), int(round(w * im_scale))
        # TODO(synk): cv2.resize(INTER_LINEAR) half-pixel sampling is approximated with
        # jax.image.resize 'linear' (cv2 unavailable here); close but not bit-exact.
        resized = jax.image.resize(jnp.asarray(im_orig), (nh, nw, 3), method="linear")
        processed.append(resized)
        factors.append(im_scale)
    blob = jnp.stack(processed, axis=0)  # im_list_to_blob (single-scale, equal sizes)
    return blob.astype(jnp.float32), np.array(factors, dtype=np.float32)


# ----------------------------------------------------------------------------
# Tiling / VMEM helpers
# ----------------------------------------------------------------------------
def _ceil_to(v, m):
    return ((v + m - 1) // m) * m


def _lane(c):                       # channel count as laid out on the 128-lane axis
    return _ceil_to(c, 128)


def _sub(r):                        # sublane round-up
    return _ceil_to(r, 8)


def _vmem_budget_bytes():
    """~75% of this generation's physical VMEM (v5e/v6e: 96 MB, v7x: 48 MB)."""
    try:
        cap = int(pltpu.get_tpu_info().vmem_capacity_bytes)
    except Exception:
        cap = 64 << 20              # conservative fallback (v7x-sized)
    return (cap * 3) // 4


def _conv_tile_rows(H, WP, Cin, Cout, pool, budget):
    """Largest row tile (multiple of 8) whose full working set fits the VMEM budget."""
    Kf = 3 * Cin
    best = 8
    for cand in (64, 48, 32, 16, 8):
        xbuf = 2 * (cand + 2) * _sub(WP + 2) * _lane(Cin) * 2      # manual double buffer
        stage = (cand + 2) * _sub(WP) * _lane(Kf) * 2              # kw-folded staging value
        patch = cand * _sub(WP) * _lane(Kf) * 2                    # live matmul operand
        acc = 2 * cand * WP * _lane(Cout) * 4                      # f32 acc + dot result
        wts = 2 * 3 * Kf * _lane(Cout) * 2 + 8 * _lane(Cout)       # 2x-buffered weights+bias
        if pool:
            outb = 2 * (cand // 2) * _sub(WP // 2) * _lane(Cout) * 2
            poolb = (cand + cand // 2) * _sub(WP) * _lane(Cout) * 4
        else:
            outb = 2 * cand * _sub(WP) * _lane(Cout) * 2
            poolb = 0
        need = xbuf + stage + patch + acc + wts + outb + poolb + (4 << 20)
        if need <= (budget * 7) // 8:
            best = cand
            break
    th = min(best, _ceil_to(max(H, 8), 8))
    n_tiles = -(-H // th)
    # Balance tile heights across the fixed tile count (no tiny tail tile; also evens
    # the split if a 2-TensorCore part shards the row axis).
    th = max(8, _ceil_to(-(-H // n_tiles), 8))
    n_tiles = -(-H // th)
    return th, n_tiles


def _pixel_tile_rows(H, WP, K, Cout, budget):
    best = 8
    for cand in (128, 64, 32, 16, 8):
        inb = 2 * cand * _sub(WP) * _lane(K) * 2
        outb = 2 * cand * _sub(WP) * _lane(Cout) * 2
        acc = 2 * cand * WP * _lane(Cout) * 4
        need = inb + outb + acc + (4 << 20)
        if need <= (budget * 7) // 8:
            best = cand
            break
    th = min(best, _ceil_to(max(H, 8), 8))
    n_tiles = -(-H // th)
    th = max(8, _ceil_to(-(-H // n_tiles), 8))
    n_tiles = -(-H // th)
    return th, n_tiles


# ----------------------------------------------------------------------------
# Generic kernel: 3x3 "same" conv + bias + ReLU (+ optional fused 2x2 max-pool)
# ----------------------------------------------------------------------------
def _make_conv_kernel(TH, WP, Cin, Cout, H, W, n_tiles, pool):
    THh, WPh = TH // 2, WP // 2
    Kf = 3 * Cin
    rows_first = min(TH + 1, H)                                       # rows DMA'd for tile 0
    rows_last = (H - (n_tiles - 1) * TH + 1) if n_tiles > 1 else None  # rows DMA'd, last tile
    last_slot = (n_tiles - 1) % 2

    def kernel(x_hbm, w_ref, b_ref, o_ref, xbuf, sem, *pscratch):
        n = pl.program_id(0)
        i = pl.program_id(1)
        slot = i % 2
        nslot = 1 - slot

        def halo_copy(case, j, s):
            # All copy shapes are static; `case` selects which static copy this is.
            if case == 0:        # first tile: image rows [0, rows_first) -> local rows 1..
                src = x_hbm.at[n, pl.ds(0, rows_first), pl.ds(0, W)]
                dst = xbuf.at[s, pl.ds(1, rows_first), pl.ds(1, W)]
            elif case == 1:      # interior tile: image rows [j*TH-1, j*TH+TH+1)
                src = x_hbm.at[n, pl.ds(j * TH - 1, TH + 2), pl.ds(0, W)]
                dst = xbuf.at[s, pl.ds(0, TH + 2), pl.ds(1, W)]
            else:                # last tile: image rows [(n_tiles-1)*TH-1, H)
                src = x_hbm.at[n, pl.ds((n_tiles - 1) * TH - 1, rows_last), pl.ds(0, W)]
                dst = xbuf.at[s, pl.ds(0, rows_last), pl.ds(1, W)]
            return pltpu.make_async_copy(src, dst, sem.at[s])

        def fetch(j, s, op):     # op: "start" | "wait"; dispatch over the static cases
            @pl.when(j == 0)
            def _():
                getattr(halo_copy(0, j, s), op)()
            if n_tiles > 2:
                @pl.when(jnp.logical_and(j > 0, j < n_tiles - 1))
                def _():
                    getattr(halo_copy(1, j, s), op)()
            if n_tiles > 1:
                @pl.when(j == n_tiles - 1)
                def _():
                    getattr(halo_copy(2, j, s), op)()

        # (a) Per-image init: zero the 'same'-padding columns of both slots (the DMAs only
        #     ever write columns [1, W+1)), the top pad row, and prime tile 0's halo.
        @pl.when(i == 0)
        def _():
            for s in range(2):
                xbuf[s, :, 0:1, :] = jnp.zeros((TH + 2, 1, Cin), xbuf.dtype)
                xbuf[s, :, W + 1:WP + 2, :] = jnp.zeros((TH + 2, WP + 1 - W, Cin),
                                                        xbuf.dtype)
            xbuf[0, 0:1, :, :] = jnp.zeros((1, WP + 2, Cin), xbuf.dtype)
            if n_tiles == 1:
                xbuf[0, H + 1:H + 2, :, :] = jnp.zeros((1, WP + 2, Cin), xbuf.dtype)
            halo_copy(0, 0, 0).start()

        # (b) Prefetch the next tile's halo into the other slot (hidden behind compute).
        if n_tiles > 1:
            fetch(i + 1, nslot, "start")        # no branch fires when i + 1 == n_tiles

        # (c) Wait for this tile's halo.
        fetch(i, slot, "wait")

        # (d) Bottom 'same'-pad row of the last tile (its DMA only fills rows [0, rows_last)).
        if n_tiles > 1:
            @pl.when(i == n_tiles - 1)
            def _():
                xbuf[last_slot, rows_last:rows_last + 1, :, :] = jnp.zeros(
                    (1, WP + 2, Cin), xbuf.dtype)

        # (e) kw-folded im2col: stage[r, c, kw*Cin+ci] = x[r, c+kw, ci]; the kh taps are
        #     then cheap leading-dim slices -> 3 MXU matmuls with K = 3*Cin.
        # TODO(synk): the kw=1,2 slices are still unaligned sublane shifts; pltpu.roll on
        # the width axis + an aligned slice would move that relayout onto the XLU.
        xbv = xbuf[slot]                                        # (TH+2, WP+2, Cin) bf16
        stage = jnp.concatenate(
            [xbv[:, 0:WP, :], xbv[:, 1:WP + 1, :], xbv[:, 2:WP + 2, :]], axis=-1)

        acc = jnp.zeros((TH * WP, Cout), jnp.float32)
        for kh in range(3):
            patch = stage[kh:kh + TH].reshape(TH * WP, Kf)
            acc = acc + jnp.dot(patch, w_ref[kh], preferred_element_type=jnp.float32)
        y = jnp.maximum(acc + b_ref[...], 0.0)                  # bias + ReLU in f32

        if not pool:
            o_ref[0] = y.reshape(TH, WP, Cout).astype(o_ref.dtype)
        else:
            # Fused MaxPool2d(2) epilogue, reduced in f32, single cast on the store.
            ybuf, rbuf = pscratch
            ybuf[...] = y.reshape(TH, WP, Cout)
            r0 = ybuf[pl.ds(0, THh, 2), :, :]                   # even conv rows
            r1 = ybuf[pl.ds(1, THh, 2), :, :]                   # odd conv rows
            rbuf[...] = jnp.maximum(r0, r1)
            c0 = rbuf[:, pl.ds(0, WPh, 2), :]                   # even conv cols
            c1 = rbuf[:, pl.ds(1, WPh, 2), :]                   # odd conv cols
            o_ref[0] = jnp.maximum(c0, c1).astype(o_ref.dtype)

    return kernel


def conv3x3_relu(x, H, W, w, b, *, pool=False):
    """3x3 'same' conv + bias + ReLU (+ optional fused 2x2/stride-2 max pool).

    x: (N, >=H, >=W, Cin) bf16; only x[:, :H, :W, :] is valid data (read via halo DMA).
    Returns (y, Hout, Wout): y is (N, HP(/2), WP(/2), Cout) bf16; only y[:, :Hout, :Wout, :]
    is valid (the rest is tile/width round-up junk that later layers never read).
    """
    N, Cin = x.shape[0], x.shape[3]
    Cout = w.shape[-1]
    WP = _ceil_to(max(W, 8), 8)
    budget = _vmem_budget_bytes()
    TH, n_tiles = _conv_tile_rows(H, WP, Cin, Cout, pool, budget)
    HP = n_tiles * TH
    THh, WPh = TH // 2, WP // 2

    xk = x if x.dtype == jnp.bfloat16 else x.astype(jnp.bfloat16)
    # kw-folded weights: wf[kh, kw*Cin + ci, co] = w[kh, kw, ci, co]  (HWIO input)
    wf = jnp.asarray(w, jnp.bfloat16).reshape(3, 3 * Cin, Cout)
    bk = jnp.asarray(b, jnp.float32).reshape(1, Cout)

    scratch = [pltpu.VMEM((2, TH + 2, WP + 2, Cin), jnp.bfloat16),
               pltpu.SemaphoreType.DMA((2,))]
    if pool:
        Hout, Wout = H // 2, W // 2
        out_shape = jax.ShapeDtypeStruct((N, HP // 2, WPh, Cout), jnp.bfloat16)
        out_spec = pl.BlockSpec((1, THh, WPh, Cout), lambda n, i: (n, i, 0, 0))
        scratch += [pltpu.VMEM((TH, WP, Cout), jnp.float32),
                    pltpu.VMEM((THh, WP, Cout), jnp.float32)]
    else:
        Hout, Wout = H, W
        out_shape = jax.ShapeDtypeStruct((N, HP, WP, Cout), jnp.bfloat16)
        out_spec = pl.BlockSpec((1, TH, WP, Cout), lambda n, i: (n, i, 0, 0))

    kernel = _make_conv_kernel(TH, WP, Cin, Cout, H, W, n_tiles, pool)
    y = pl.pallas_call(
        kernel,
        out_shape=out_shape,
        grid=(N, n_tiles),
        in_specs=[
            pl.BlockSpec(memory_space=pl.ANY),                          # activations in HBM
            pl.BlockSpec((3, 3 * Cin, Cout), lambda n, i: (0, 0, 0)),   # VMEM-resident
            pl.BlockSpec((1, Cout), lambda n, i: (0, 0)),
        ],
        out_specs=out_spec,
        scratch_shapes=scratch,
        compiler_params=pltpu.CompilerParams(
            # Row axis carries the cross-step prefetch state -> "arbitrary".
            # TODO(synk): a core_parallel outer axis could split rows across the two v7x
            # TensorCores while keeping a per-core prefetch chain.
            dimension_semantics=("parallel", "arbitrary"),
            vmem_limit_bytes=budget,
        ),
    )(xk, wf, bk)
    return y, Hout, Wout


# ----------------------------------------------------------------------------
# conv1_1: dedicated K=27 pixel-matmul kernel (Cin=3 would waste lanes / MXU depth)
# ----------------------------------------------------------------------------
def _make_pixel_kernel(TH, WP, K, Cout):
    def kernel(x_ref, w_ref, b_ref, o_ref):
        patch = x_ref[0].reshape(TH * WP, K)
        acc = jnp.dot(patch, w_ref[...], preferred_element_type=jnp.float32)
        y = jnp.maximum(acc + b_ref[...], 0.0)
        o_ref[0] = y.reshape(TH, WP, Cout).astype(o_ref.dtype)
    return kernel


def conv1_first(x, H, W, w, b):
    """conv1_1 as a K=27 matmul per pixel (wrapper-side 3x3 im2col of the 3-ch image)."""
    N = x.shape[0]
    Cout = w.shape[-1]
    K = 27
    WP = _ceil_to(max(W, 8), 8)
    budget = _vmem_budget_bytes()
    TH, n_tiles = _pixel_tile_rows(H, WP, K, Cout, budget)
    HP = n_tiles * TH

    xb = x.astype(jnp.bfloat16)
    xpad = jnp.pad(xb, ((0, 0), (1, 1), (1, 1), (0, 0)))
    cols = [xpad[:, dh:dh + H, dw:dw + W, :] for dh in range(3) for dw in range(3)]
    x27 = jnp.concatenate(cols, axis=-1)                          # (N, H, W, 27)
    x27 = jnp.pad(x27, ((0, 0), (0, HP - H), (0, WP - W), (0, 0)))

    w2d = jnp.asarray(w, jnp.bfloat16).reshape(K, Cout)           # (dh, dw, ci) row-major
    bk = jnp.asarray(b, jnp.float32).reshape(1, Cout)

    kernel = _make_pixel_kernel(TH, WP, K, Cout)
    y = pl.pallas_call(
        kernel,
        out_shape=jax.ShapeDtypeStruct((N, HP, WP, Cout), jnp.bfloat16),
        grid=(N, n_tiles),
        in_specs=[
            pl.BlockSpec((1, TH, WP, K), lambda n, i: (n, i, 0, 0)),
            pl.BlockSpec((K, Cout), lambda n, i: (0, 0)),
            pl.BlockSpec((1, Cout), lambda n, i: (0, 0)),
        ],
        out_specs=pl.BlockSpec((1, TH, WP, Cout), lambda n, i: (n, i, 0, 0)),
        compiler_params=pltpu.CompilerParams(
            dimension_semantics=("parallel", "parallel"),
            vmem_limit_bytes=budget,
        ),
    )(x27, w2d, bk)
    return y


# ----------------------------------------------------------------------------
# Parameters (deterministic synthetic init; shapes from VGG16.__init__, bn=False)
# ----------------------------------------------------------------------------
VGG16_CFG = [
    [(3, 64), (64, 64)],                       # conv1 + pool
    [(64, 128), (128, 128)],                   # conv2 + pool
    [(128, 256), (256, 256), (256, 256)],      # conv3 + pool
    [(256, 512), (512, 512), (512, 512)],      # conv4 + pool
    [(512, 512), (512, 512), (512, 512)],      # conv5 (no pool)
]
POOL_AFTER = [True, True, True, True, False]


def init_params(key):
    params = []
    for block in VGG16_CFG:
        blk = []
        for cin, cout in block:
            key, kw_, kb = jax.random.split(key, 3)
            std = (2.0 / (9.0 * cin)) ** 0.5
            w = jax.random.normal(kw_, (3, 3, cin, cout), jnp.float32) * std * 0.5  # HWIO
            bb = jax.random.normal(kb, (cout,), jnp.float32) * 0.01
            blk.append((w, bb))
        params.append(blk)
    return params


# ----------------------------------------------------------------------------
# Forward pass (mirrors VGG16.forward); the faster_rcnn Conv2d is conv+ReLU (bn=False),
# and each block's trailing nn.MaxPool2d(2) is fused into its last conv kernel.
# ----------------------------------------------------------------------------
def vgg16_forward(image, params, scales=SCALES, max_size=MAX_SIZE):
    im_data, im_scales = get_blobs(image, scales, max_size)
    im_info = np.array(
        [[im_data.shape[1], im_data.shape[2], im_scales[0]]], dtype=np.float32)

    x = im_data                                  # NHWC f32
    H, W = x.shape[1], x.shape[2]

    # conv1_1 via the dedicated K=27 kernel.
    w11, b11 = params[0][0]
    x = conv1_first(x, H, W, w11, b11)

    # TODO(synk): the 512-channel blocks (conv4/conv5) could be fused into one kernel each
    # (whole feature map VMEM-resident), removing four more HBM round trips.
    for bi, (blk, pool) in enumerate(zip(params, POOL_AFTER)):
        layers = blk[1:] if bi == 0 else blk
        last = len(layers) - 1
        for li, (w, b) in enumerate(layers):
            x, H, W = conv3x3_relu(x, H, W, w, b, pool=(pool and li == last))

    feat = x[:, :H, :W, :].astype(jnp.float32)   # crop tile padding, back to f32
    feat = jnp.transpose(feat, (0, 3, 1, 2))     # return NCHW like the PyTorch module
    return feat, im_info


if __name__ == "__main__":
    key = jax.random.PRNGKey(0)
    k_img, k_par = jax.random.split(key)

    # Small synthetic HWC BGR image (deterministic).
    image = jax.random.uniform(k_img, (32, 48, 3), jnp.float32) * 255.0
    params = init_params(k_par)

    # Scaled-down pyramid constants for the small demo (the original module uses
    # SCALES=(600,), MAX_SIZE=1000 with the identical formula); resized blob is (1,16,24,3).
    feat, im_info = vgg16_forward(np.asarray(image), params, scales=(16,), max_size=32)

    feat = jax.block_until_ready(feat)
    assert feat.shape[0] == 1 and feat.shape[1] == 512
    assert bool(jnp.all(jnp.isfinite(feat)))
    print("KERNEL_OK")
</pallas_src>

<mosaic_0001>
module attributes {stable_mosaic.version = 11 : i64} {
  func.func @kernel(%arg0: i32, %arg1: i32, %arg2: memref<1x16x24x27xbf16, #tpu.memory_space<vmem>>, %arg3: memref<27x64xbf16, #tpu.memory_space<vmem>>, %arg4: memref<1x64xf32, #tpu.memory_space<vmem>>, %arg5: memref<1x16x24x64xbf16, #tpu.memory_space<vmem>>) attributes {dimension_semantics = [#tpu.dimension_semantics<parallel>, #tpu.dimension_semantics<parallel>], iteration_bounds = array<i64: 1, 1>, scalar_prefetch = 0 : i64, scratch_operands = 0 : i64, tpu.core_type = #tpu.core_type<tc>, window_params = [{transform_indices = @transform_0, window_bounds = array<i64: 1, 16, 24, 27>}, {pipeline_mode = #tpu.pipeline_mode<synchronous>, transform_indices = @transform_1, window_bounds = array<i64: 27, 64>}, {pipeline_mode = #tpu.pipeline_mode<synchronous>, transform_indices = @transform_2, window_bounds = array<i64: 1, 64>}, {transform_indices = @transform_3, window_bounds = array<i64: 1, 16, 24, 64>}]} {
    %c0 = arith.constant 0 : index
    %c0_0 = arith.constant 0 : index
    %c0_1 = arith.constant 0 : index
    %c0_2 = arith.constant 0 : index
    %0 = vector.load %arg2[%c0, %c0_0, %c0_1, %c0_2] : memref<1x16x24x27xbf16, #tpu.memory_space<vmem>>, vector<1x16x24x27xbf16>
    %1 = vector.shape_cast %0 : vector<1x16x24x27xbf16> to vector<16x24x27xbf16>
    %2 = vector.shape_cast %1 : vector<16x24x27xbf16> to vector<384x27xbf16>
    %c0_3 = arith.constant 0 : index
    %c0_4 = arith.constant 0 : index
    %3 = vector.load %arg3[%c0_3, %c0_4] : memref<27x64xbf16, #tpu.memory_space<vmem>>, vector<27x64xbf16>
    %cst = arith.constant dense<0.000000e+00> : vector<384x64xf32>
    %4 = tpu.matmul %2, %3, %cst {dimension_numbers = #tpu.dot_dimension_numbers<[1], [0], [0], [1], [0, 0, 1, 1], [], []>} : vector<384x27xbf16>, vector<27x64xbf16>, vector<384x64xf32> -> vector<384x64xf32>
    %c0_5 = arith.constant 0 : index
    %c0_6 = arith.constant 0 : index
    %5 = vector.load %arg4[%c0_5, %c0_6] : memref<1x64xf32, #tpu.memory_space<vmem>>, vector<1x64xf32>
    %6 = vector.broadcast %5 : vector<1x64xf32> to vector<384x64xf32>
    %7 = arith.addf %4, %6 : vector<384x64xf32>
    %cst_7 = arith.constant 0.000000e+00 : f32
    %8 = vector.broadcast %cst_7 : f32 to vector<384x64xf32>
    %9 = arith.maximumf %7, %8 : vector<384x64xf32>
    %10 = vector.shape_cast %9 : vector<384x64xf32> to vector<16x24x64xf32>
    %11 = arith.truncf %10 : vector<16x24x64xf32> to vector<16x24x64xbf16>
    %c0_8 = arith.constant 0 : index
    %c0_9 = arith.constant 0 : index
    %c0_10 = arith.constant 0 : index
    %c0_11 = arith.constant 0 : index
    %12 = vector.load %arg5[%c0_8, %c0_9, %c0_10, %c0_11] : memref<1x16x24x64xbf16, #tpu.memory_space<vmem>>, vector<1x16x24x64xbf16>
    %13 = vector.shape_cast %12 : vector<1x16x24x64xbf16> to vector<16x24x64xbf16>
    %14 = vector.shape_cast %11 : vector<16x24x64xbf16> to vector<1x16x24x64xbf16>
    tpu.vector_store %arg5[%c0_8, %c0_9, %c0_10, %c0_11], %14 {strides = array<i32>} : memref<1x16x24x64xbf16, #tpu.memory_space<vmem>>, vector<1x16x24x64xbf16>,
    return
  }
  func.func @transform_0(%arg0: i32, %arg1: i32) -> (i32, i32, i32, i32) {
    %c0_i32 = arith.constant 0 : i32
    %c0_i32_0 = arith.constant 0 : i32
    %c0_i32_1 = arith.constant 0 : i32
    return %arg0, %arg1, %c0_i32, %c0_i32_0 : i32, i32, i32, i32
  }
  func.func @transform_1(%arg0: i32, %arg1: i32) -> (i32, i32) {
    %c0_i32 = arith.constant 0 : i32
    %c0_i32_0 = arith.constant 0 : i32
    %c0_i32_1 = arith.constant 0 : i32
    return %c0_i32, %c0_i32_0 : i32, i32
  }
  func.func @transform_2(%arg0: i32, %arg1: i32) -> (i32, i32) {
    %c0_i32 = arith.constant 0 : i32
    %c0_i32_0 = arith.constant 0 : i32
    %c0_i32_1 = arith.constant 0 : i32
    return %c0_i32, %c0_i32_0 : i32, i32
  }
  func.func @transform_3(%arg0: i32, %arg1: i32) -> (i32, i32, i32, i32) {
    %c0_i32 = arith.constant 0 : i32
    %c0_i32_0 = arith.constant 0 : i32
    %c0_i32_1 = arith.constant 0 : i32
    return %arg0, %arg1, %c0_i32, %c0_i32_0 : i32, i32, i32, i32
  }
}

</mosaic_0001>

<bundles_post_ra>
// kernel: tpu_custom_call.1
= control target key start
LH: loop header
LB: loop body
LE: loop exit
PB: predicated region body
PF: predicated region fallthrough
CT: control target
= control target key end

     0   :  { %8 = vsyncpa [#allocation3], 0  ;;  %s1391_s0 = inlined_call_operand.hbm [shape: bf16[1,16,24,27], index: 0, kind: input, shape index: {}]   ;;  %s1392_s1 = inlined_call_operand.hbm [shape: bf16[27,64], index: 1, kind: input, shape index: {}]   ;;  %s1393_s2 = inlined_call_operand.vmem [shape: f32[1,64], index: 2, kind: input, shape index: {}]   ;;  %s1394_s3 = inlined_call_operand.hbm [shape: bf16[1,16,24,64], index: 3, kind: output, shape index: {}]  }
   0x1   :  { %9 = vsyncpa [#allocation6], 0 }
   0x2   :  { %10 = vsyncpa [#allocation4], 0  ;;  %s1195_s12 = smov [#allocation2]   ;;  %s1123_s16 = scalar_lea.hbm %s1391_s0, 3072 }
   0x3   :  { %s16_s13 = sshll.u32 %s1195_s12, 4  ;;  %p1124_p0 = scmp.ne.s32.totalorder %s1391_s0, %s1123_s16  ;;  %s17_s13 = int_to_ptr.vmem [resolvable:$true] %s16_s13 }
   0x4   :  { %p1127_p1 = scmp.lt.u32.totalorder %s1123_s16, %s1391_s0 }
   0x6   :  { %p1129_p2 = pnand %p1127_p1, %p1124_p0 }
   0x8   :  { %1132 = shalt.err (!%p1129_p2)
}
   0x9   :  { %s1133_s21 = scalar_lea.vmem %s17_s13, 3072  ;;  %p1138_p4 = scmp.lt.s32.totalorder %s17_s13, %s17_s13 }
   0xa   :  { %p1134_p3 = scmp.ne.s32.totalorder %s17_s13, %s1133_s21  ;;  %p1139_p5 = scmp.lt.s32.totalorder %s1133_s21, %s1133_s21 }
   0xc   :  { %p1140_p6 = por %p1139_p5, %p1138_p4 }
   0xe   :  { %p1141_p7 = pnand %p1140_p6, %p1134_p3 }
  0x10   :  { %1144 = shalt.err (!%p1141_p7)
}
  0x11   :  { %s1196_s22 = smov 64   ;;  %s1197_s23 = smov 4  }
  0x12   :  { %22 = dma.hbm_to_vmem [thread:$0]  %s1391_s0, 3072, %s17_s13, [#allocation3], %s1196_s22, %s1196_s22, %s1197_s23  }
  0x13   :  { %s1198_s26 = smov [#allocation5]   ;;  %s1145_s30 = scalar_lea.hbm %s1392_s1, 256 }
  0x14   :  { %s28_s27 = sshll.u32 %s1198_s26, 4  ;;  %p1146_p8 = scmp.ne.s32.totalorder %s1392_s1, %s1145_s30  ;;  %s29_s27 = int_to_ptr.vmem [resolvable:$true] %s28_s27 }
  0x15   :  { %p1149_p9 = scmp.lt.u32.totalorder %s1145_s30, %s1392_s1 }
  0x17   :  { %p1151_p10 = pnand %p1149_p9, %p1146_p8 }
  0x19   :  { %1154 = shalt.err (!%p1151_p10)
}
  0x1a   :  { %s1155_s8 = scalar_lea.vmem %s29_s27, 256  ;;  %p1160_p12 = scmp.lt.s32.totalorder %s29_s27, %s29_s27 }
  0x1b   :  { %p1156_p11 = scmp.ne.s32.totalorder %s29_s27, %s1155_s8  ;;  %p1161_p13 = scmp.lt.s32.totalorder %s1155_s8, %s1155_s8 }
  0x1d   :  { %p1162_p0 = por %p1161_p13, %p1160_p12 }
  0x1f   :  { %p1163_p1 = pnand %p1162_p0, %p1156_p11 }
  0x21   :  { %1166 = shalt.err (!%p1163_p1)
}
  0x22   :  { %34 = dma.hbm_to_vmem [thread:$0]  %s1392_s1, 256, %s29_s27, [#allocation6], %s1196_s22, %s1196_s22, %s1197_s23  }
  0x23   :  { %1189 = dma.done.wait [#allocation3], 3072  }
  0x24   :  { %1190 = vsyncadd [#allocation3], 4294964224 }
  0x25   :  { %1191 = dma.done.wait [#allocation6], 256  }
  0x26   :  { %1192 = vsyncadd [#allocation6], 4294967040  ;;  %vm307_vm0 = vcmask 1044480   ;;  %vm308_vm1 = vcmask 1045504   ;;  %v1199_v0 = vmov 65535   ;;  %vm234_vm2 = vcmask 220160  }
  0x27   :  { %v309_v1 = vsel %vm307_vm0, 4294967295, %v1199_v0  ;;  %v1097_v2 = vld [vmem:[#allocation5] sm:$0xff]   ;;  %v1098_v4 = vld [vmem:[#allocation5 + $0x8] sm:$0x3f]   ;;  %v1103_v10 = vld [vmem:[#allocation2 + $0x10] sm:$0xff]   ;;  %vm795_vm3 = vcmask 519168  }
  0x28   :  { %v310_v3 = vsel %vm308_vm1, %v309_v1, 0  ;;  %1035 = vmatprep.subr.bf16.mxu0 %v1097_v2  ;;  %1087 = vmatprep.subr.bf16.mxu1 %v1097_v2  ;;  %v1099_v5 = vld [vmem:[#allocation2] sm:$0xff]   ;;  %v1101_v8 = vld [vmem:[#allocation2 + $0x8] sm:$0xff]   ;;  %v1104_v11 = vld [vmem:[#allocation2 + $0x70] sm:$0xff]  }
  0x29   :  { %1036 = vmatpush3.bf16.msra.mxu0 %v1097_v2  ;;  %1089 = vmatpush3.bf16.msra.mxu1 %v1097_v2  ;;  %v312_v6 = vand.u32 %v1098_v4, %v310_v3  ;;  %v1100_v7 = vld [vmem:[#allocation2 + $0x60] sm:$0xff]   ;;  %v1102_v9 = vld [vmem:[#allocation2 + $0x68] sm:$0xff]   ;;  %v1105_v12 = vld [vmem:[#allocation2 + $0x18] sm:$0xff]  }
  0x2a   :  { %1039 = vmatprep.mubr.msk.bf16.mxu0 %vm234_vm2, %v1099_v5  ;;  %1063 = vmatprep.mubr.msk.bf16.mxu1 %vm234_vm2, %v1100_v7  ;;  %v1106_v13 = vld [vmem:[#allocation2 + $0x78] sm:$0xff]   ;;  %v1107_v14 = vld [vmem:[#allocation2 + $0x20] sm:$0xff]   ;;  %v1109_v16 = vld [vmem:[#allocation2 + $0x28] sm:$0xff]  }
  0x2b   :  { %1037 = vmatprep.subr.bf16.mxu0 %v312_v6  ;;  %1088 = vmatprep.subr.bf16.mxu1 %v312_v6  ;;  %v1108_v15 = vld [vmem:[#allocation2 + $0x80] sm:$0xff]   ;;  %v1110_v17 = vld [vmem:[#allocation2 + $0x88] sm:$0xff]   ;;  %v1111_v18 = vld [vmem:[#allocation2 + $0x30] sm:$0xff]  }
  0x2c   :  { %v1112_v19 = vld [vmem:[#allocation2 + $0x90] sm:$0xff]   ;;  %v1113_v20 = vld [vmem:[#allocation2 + $0x38] sm:$0xff]   ;;  %v1115_v22 = vld [vmem:[#allocation2 + $0x40] sm:$0xff]  }
  0x2d   :  { %1038 = vmatpush3.bf16.msra.mxu0 %v312_v6  ;;  %1090 = vmatpush3.bf16.msra.mxu1 %v312_v6  ;;  %v1114_v21 = vld [vmem:[#allocation2 + $0x98] sm:$0xff]   ;;  %v1116_v23 = vld [vmem:[#allocation2 + $0xa0] sm:$0xff]   ;;  %v1117_v24 = vld [vmem:[#allocation2 + $0x48] sm:$0xff]  }
  0x2e   :  { %v1118_v25 = vld [vmem:[#allocation2 + $0xa8] sm:$0xff]   ;;  %v1119_v26 = vld [vmem:[#allocation2 + $0x50] sm:$0xff]   ;;  %v1121_v28 = vld [vmem:[#allocation2 + $0x58] sm:$0xff]  }
  0x2f   :  { %v1120_v27 = vld [vmem:[#allocation2 + $0xb0] sm:$0xff]   ;;  %v1122_v29 = vld [vmem:[#allocation2 + $0xb8] sm:$0xff]   ;;  %v1278_v30 = vld [vmem:[%s1393_s2] ss:$0 sm:$0xff]  ;;  %s1200_s2 = smov [#allocation7]  }
  0x30   :  { %1040 = vmatmul.mubr.msk.bf16.vlgmr.msra.gmra.mrb[0].mxu0 %vm234_vm2, %v1101_v8  ;;  %1064 = vmatmul.mubr.msk.bf16.vlgmr.msra.gmra.mrb[0].mxu1 %vm234_vm2, %v1102_v9  ;;  %s849_s11 = sshll.u32 %s1200_s2, 4  ;;  %s850_s11 = int_to_ptr.vmem [resolvable:$true] %s849_s11 }
  0x31   :  { %1043 = vmatprep.mubr.msk.bf16.mxu0 %vm234_vm2, %v1103_v10  ;;  %1067 = vmatprep.mubr.msk.bf16.mxu1 %vm234_vm2, %v1104_v11  ;;  %s1167_s12 = scalar_lea.vmem %s850_s11, 3072  ;;  %p1172_p3 = scmp.lt.s32.totalorder %s850_s11, %s850_s11 }
  0x32   :  { %p1168_p2 = scmp.ne.s32.totalorder %s850_s11, %s1167_s12  ;;  %p1173_p4 = scmp.lt.s32.totalorder %s1167_s12, %s1167_s12 }
  0x34   :  { %p1174_p5 = por %p1173_p4, %p1172_p3 }
  0x36   :  { %p1175_p6 = pnand %p1174_p5, %p1168_p2 }
  0x38   :  { %1044 = vmatmul.mubr.msk.bf16.gmra.mrb[4].mxu0 %vm234_vm2, %v1105_v12  ;;  %1068 = vmatmul.mubr.msk.bf16.gmra.mrb[4].mxu1 %vm234_vm2, %v1106_v13 }
  0x39   :  { %1047 = vmatprep.mubr.msk.bf16.mxu0 %vm234_vm2, %v1107_v14  ;;  %1071 = vmatprep.mubr.msk.bf16.mxu1 %vm234_vm2, %v1108_v15 }
  0x40   :  { %1048 = vmatmul.mubr.msk.bf16.gmra.mrb[8].mxu0 %vm234_vm2, %v1109_v16  ;;  %1072 = vmatmul.mubr.msk.bf16.gmra.mrb[8].mxu1 %vm234_vm2, %v1110_v17 }
  0x41   :  { %1051 = vmatprep.mubr.msk.bf16.mxu0 %vm234_vm2, %v1111_v18  ;;  %1075 = vmatprep.mubr.msk.bf16.mxu1 %vm234_vm2, %v1112_v19 }
  0x48   :  { %1052 = vmatmul.mubr.msk.bf16.gmra.mrb[12].mxu0 %vm234_vm2, %v1113_v20  ;;  %1076 = vmatmul.mubr.msk.bf16.gmra.mrb[12].mxu1 %vm234_vm2, %v1114_v21 }
  0x49   :  { %1055 = vmatprep.mubr.msk.bf16.mxu0 %vm234_vm2, %v1115_v22  ;;  %1079 = vmatprep.mubr.msk.bf16.mxu1 %vm234_vm2, %v1116_v23 }
  0x50   :  { %1056 = vmatmul.mubr.msk.bf16.gmra.mrb[16].mxu0 %vm234_vm2, %v1117_v24  ;;  %1080 = vmatmul.mubr.msk.bf16.gmra.mrb[16].mxu1 %vm234_vm2, %v1118_v25 }
  0x51   :  { %1059 = vmatprep.mubr.msk.bf16.mxu0 %vm234_vm2, %v1119_v26  ;;  %1083 = vmatprep.mubr.msk.bf16.mxu1 %vm234_vm2, %v1120_v27 }
  0x58   :  { %1060 = vmatmul.mubr.msk.bf16.gmra.mrb[20].mxu0 %vm234_vm2, %v1121_v28  ;;  %1084 = vmatmul.mubr.msk.bf16.gmra.mrb[20].mxu1 %vm234_vm2, %v1122_v29 }
 0x103   :  { %v1041_v31 = vpop.f32.mrb[0].mxu0  ;;  %v1065_v32 = vpop.f32.mrb[0].mxu1 }
 0x104   :  { %v357_v33 = vadd.f32 %v1041_v31, %v1278_v30  ;;  %v453_v34 = vadd.f32 %v1065_v32, %v1278_v30  ;;  %v348_v35 = vpop.f32.mrb[1].mxu0  ;;  %v444_v36 = vpop.f32.mrb[1].mxu1 }
 0x105   :  { %v349_v37 = vadd.f32 %v1278_v30, %v348_v35  ;;  %v445_v38 = vadd.f32 %v1278_v30, %v444_v36  ;;  %v1042_v39 = vpop.f32.mrb[2].mxu0  ;;  %v1066_v40 = vpop.f32.mrb[2].mxu1 }
 0x106   :  { %v541_v41 = vmax.f32 %v357_v33, 0.0  ;;  %v565_v42 = vmax.f32 %v453_v34, 0.0  ;;  %v360_v43 = vadd.f32 %v1042_v39, %v1278_v30  ;;  %v456_v44 = vadd.f32 %v1066_v40, %v1278_v30  ;;  %v351_v45 = vpop.f32.mrb[3].mxu0  ;;  %v447_v46 = vpop.f32.mrb[3].mxu1 }
 0x107   :  { %v539_v47 = vmax.f32 %v349_v37, 0.0  ;;  %v563_v48 = vmax.f32 %v445_v38, 0.0  ;;  %v352_v49 = vadd.f32 %v1278_v30, %v351_v45  ;;  %v448_v50 = vadd.f32 %v1278_v30, %v447_v46 }
 0x108   :  { %v963_v51 = vpack.c.bf16 %v541_v41, %v541_v41  ;;  %v987_v52 = vpack.c.bf16 %v565_v42, %v565_v42  ;;  %v542_v53 = vmax.f32 %v360_v43, 0.0  ;;  %v566_v54 = vmax.f32 %v456_v44, 0.0 }
 0x109   :  { %v961_v55 = vpack.c.bf16 %v539_v47, %v539_v47  ;;  %v985_v56 = vpack.c.bf16 %v563_v48, %v563_v48  ;;  %v540_v57 = vmax.f32 %v352_v49, 0.0  ;;  %v564_v58 = vmax.f32 %v448_v50, 0.0 }
 0x10a   :  { %798 = vst.msk [vmem:[#allocation7 + $0x8] sm:$0xf] %vm795_vm3, %v963_v51  ;;  %822 = vst.msk [vmem:[#allocation7 + $0x68] sm:$0xf] %vm795_vm3, %v987_v52  ;;  %v964_v59 = vpack.c.bf16 %v542_v53, %v542_v53  ;;  %v988_v60 = vpack.c.bf16 %v566_v54, %v566_v54 }
 0x10b   :  { %796 = vst.msk [vmem:[#allocation7] sm:$0xf] %vm795_vm3, %v961_v55  ;;  %820 = vst.msk [vmem:[#allocation7 + $0x60] sm:$0xf] %vm795_vm3, %v985_v56  ;;  %v962_v61 = vpack.c.bf16 %v540_v57, %v540_v57  ;;  %v986_v62 = vpack.c.bf16 %v564_v58, %v564_v58  ;;  %v1045_v63 = vpop.f32.mrb[4].mxu0  ;;  %v1069_v0 = vpop.f32.mrb[4].mxu1 }
 0x10c   :  { %799 = vst.msk [vmem:[#allocation7 + $0xc] sm:$0xf] %vm795_vm3, %v964_v59  ;;  %823 = vst.msk [vmem:[#allocation7 + $0x6c] sm:$0xf] %vm795_vm3, %v988_v60  ;;  %v373_v1 = vadd.f32 %v1045_v63, %v1278_v30  ;;  %v469_v2 = vadd.f32 %v1069_v0, %v1278_v30  ;;  %v364_v3 = vpop.f32.mrb[5].mxu0  ;;  %v460_v4 = vpop.f32.mrb[5].mxu1 }
 0x10d   :  { %797 = vst.msk [vmem:[#allocation7 + $0x4] sm:$0xf] %vm795_vm3, %v962_v61  ;;  %821 = vst.msk [vmem:[#allocation7 + $0x64] sm:$0xf] %vm795_vm3, %v986_v62  ;;  %v365_v5 = vadd.f32 %v1278_v30, %v364_v3  ;;  %v461_v6 = vadd.f32 %v1278_v30, %v460_v4  ;;  %v1046_v7 = vpop.f32.mrb[6].mxu0  ;;  %v1070_v8 = vpop.f32.mrb[6].mxu1 }
 0x10e   :  { %v545_v9 = vmax.f32 %v373_v1, 0.0  ;;  %v569_v10 = vmax.f32 %v469_v2, 0.0  ;;  %v376_v11 = vadd.f32 %v1046_v7, %v1278_v30  ;;  %v472_v12 = vadd.f32 %v1070_v8, %v1278_v30  ;;  %v367_v13 = vpop.f32.mrb[7].mxu0  ;;  %v463_v14 = vpop.f32.mrb[7].mxu1 }
 0x10f   :  { %v543_v15 = vmax.f32 %v365_v5, 0.0  ;;  %v567_v16 = vmax.f32 %v461_v6, 0.0  ;;  %v368_v17 = vadd.f32 %v1278_v30, %v367_v13  ;;  %v464_v18 = vadd.f32 %v1278_v30, %v463_v14 }
 0x110   :  { %v967_v19 = vpack.c.bf16 %v545_v9, %v545_v9  ;;  %v991_v20 = vpack.c.bf16 %v569_v10, %v569_v10  ;;  %v546_v21 = vmax.f32 %v376_v11, 0.0  ;;  %v570_v22 = vmax.f32 %v472_v12, 0.0 }
 0x111   :  { %v965_v23 = vpack.c.bf16 %v543_v15, %v543_v15  ;;  %v989_v24 = vpack.c.bf16 %v567_v16, %v567_v16  ;;  %v544_v25 = vmax.f32 %v368_v17, 0.0  ;;  %v568_v26 = vmax.f32 %v464_v18, 0.0 }
 0x112   :  { %802 = vst.msk [vmem:[#allocation7 + $0x18] sm:$0xf] %vm795_vm3, %v967_v19  ;;  %826 = vst.msk [vmem:[#allocation7 + $0x78] sm:$0xf] %vm795_vm3, %v991_v20  ;;  %v968_v27 = vpack.c.bf16 %v546_v21, %v546_v21  ;;  %v992_v28 = vpack.c.bf16 %v570_v22, %v570_v22 }
 0x113   :  { %800 = vst.msk [vmem:[#allocation7 + $0x10] sm:$0xf] %vm795_vm3, %v965_v23  ;;  %824 = vst.msk [vmem:[#allocation7 + $0x70] sm:$0xf] %vm795_vm3, %v989_v24  ;;  %v966_v29 = vpack.c.bf16 %v544_v25, %v544_v25  ;;  %v990_v31 = vpack.c.bf16 %v568_v26, %v568_v26  ;;  %v1049_v32 = vpop.f32.mrb[8].mxu0  ;;  %v1073_v33 = vpop.f32.mrb[8].mxu1 }
 0x114   :  { %803 = vst.msk [vmem:[#allocation7 + $0x1c] sm:$0xf] %vm795_vm3, %v968_v27  ;;  %827 = vst.msk [vmem:[#allocation7 + $0x7c] sm:$0xf] %vm795_vm3, %v992_v28  ;;  %v389_v34 = vadd.f32 %v1049_v32, %v1278_v30  ;;  %v485_v35 = vadd.f32 %v1073_v33, %v1278_v30  ;;  %v380_v36 = vpop.f32.mrb[9].mxu0  ;;  %v476_v37 = vpop.f32.mrb[9].mxu1 }
 0x115   :  { %801 = vst.msk [vmem:[#allocation7 + $0x14] sm:$0xf] %vm795_vm3, %v966_v29  ;;  %825 = vst.msk [vmem:[#allocation7 + $0x74] sm:$0xf] %vm795_vm3, %v990_v31  ;;  %v381_v38 = vadd.f32 %v1278_v30, %v380_v36  ;;  %v477_v39 = vadd.f32 %v1278_v30, %v476_v37  ;;  %v1050_v40 = vpop.f32.mrb[10].mxu0  ;;  %v1074_v41 = vpop.f32.mrb[10].mxu1 }
 0x116   :  { %v549_v42 = vmax.f32 %v389_v34, 0.0  ;;  %v573_v43 = vmax.f32 %v485_v35, 0.0  ;;  %v392_v44 = vadd.f32 %v1050_v40, %v1278_v30  ;;  %v488_v45 = vadd.f32 %v1074_v41, %v1278_v30  ;;  %v383_v46 = vpop.f32.mrb[11].mxu0  ;;  %v479_v47 = vpop.f32.mrb[11].mxu1 }
 0x117   :  { %v547_v48 = vmax.f32 %v381_v38, 0.0  ;;  %v571_v49 = vmax.f32 %v477_v39, 0.0  ;;  %v384_v50 = vadd.f32 %v1278_v30, %v383_v46  ;;  %v480_v51 = vadd.f32 %v1278_v30, %v479_v47 }
 0x118   :  { %v971_v52 = vpack.c.bf16 %v549_v42, %v549_v42  ;;  %v995_v53 = vpack.c.bf16 %v573_v43, %v573_v43  ;;  %v550_v54 = vmax.f32 %v392_v44, 0.0  ;;  %v574_v55 = vmax.f32 %v488_v45, 0.0 }
 0x119   :  { %v969_v56 = vpack.c.bf16 %v547_v48, %v547_v48  ;;  %v993_v57 = vpack.c.bf16 %v571_v49, %v571_v49  ;;  %v548_v58 = vmax.f32 %v384_v50, 0.0  ;;  %v572_v59 = vmax.f32 %v480_v51, 0.0 }
 0x11a   :  { %806 = vst.msk [vmem:[#allocation7 + $0x28] sm:$0xf] %vm795_vm3, %v971_v52  ;;  %830 = vst.msk [vmem:[#allocation7 + $0x88] sm:$0xf] %vm795_vm3, %v995_v53  ;;  %v972_v60 = vpack.c.bf16 %v550_v54, %v550_v54  ;;  %v996_v61 = vpack.c.bf16 %v574_v55, %v574_v55 }
 0x11b   :  { %804 = vst.msk [vmem:[#allocation7 + $0x20] sm:$0xf] %vm795_vm3, %v969_v56  ;;  %828 = vst.msk [vmem:[#allocation7 + $0x80] sm:$0xf] %vm795_vm3, %v993_v57  ;;  %v970_v62 = vpack.c.bf16 %v548_v58, %v548_v58  ;;  %v994_v63 = vpack.c.bf16 %v572_v59, %v572_v59  ;;  %v1053_v0 = vpop.f32.mrb[12].mxu0  ;;  %v1077_v1 = vpop.f32.mrb[12].mxu1 }
 0x11c   :  { %807 = vst.msk [vmem:[#allocation7 + $0x2c] sm:$0xf] %vm795_vm3, %v972_v60  ;;  %831 = vst.msk [vmem:[#allocation7 + $0x8c] sm:$0xf] %vm795_vm3, %v996_v61  ;;  %v405_v2 = vadd.f32 %v1053_v0, %v1278_v30  ;;  %v501_v3 = vadd.f32 %v1077_v1, %v1278_v30  ;;  %v396_v4 = vpop.f32.mrb[13].mxu0  ;;  %v492_v5 = vpop.f32.mrb[13].mxu1 }
 0x11d   :  { %805 = vst.msk [vmem:[#allocation7 + $0x24] sm:$0xf] %vm795_vm3, %v970_v62  ;;  %829 = vst.msk [vmem:[#allocation7 + $0x84] sm:$0xf] %vm795_vm3, %v994_v63  ;;  %v397_v6 = vadd.f32 %v1278_v30, %v396_v4  ;;  %v493_v7 = vadd.f32 %v1278_v30, %v492_v5  ;;  %v1054_v8 = vpop.f32.mrb[14].mxu0  ;;  %v1078_v9 = vpop.f32.mrb[14].mxu1 }
 0x11e   :  { %v553_v10 = vmax.f32 %v405_v2, 0.0  ;;  %v577_v11 = vmax.f32 %v501_v3, 0.0  ;;  %v408_v12 = vadd.f32 %v1054_v8, %v1278_v30  ;;  %v504_v13 = vadd.f32 %v1078_v9, %v1278_v30  ;;  %v399_v14 = vpop.f32.mrb[15].mxu0  ;;  %v495_v15 = vpop.f32.mrb[15].mxu1 }
 0x11f   :  { %v551_v16 = vmax.f32 %v397_v6, 0.0  ;;  %v575_v17 = vmax.f32 %v493_v7, 0.0  ;;  %v400_v18 = vadd.f32 %v1278_v30, %v399_v14  ;;  %v496_v19 = vadd.f32 %v1278_v30, %v495_v15 }
 0x120   :  { %v975_v20 = vpack.c.bf16 %v553_v10, %v553_v10  ;;  %v999_v21 = vpack.c.bf16 %v577_v11, %v577_v11  ;;  %v554_v22 = vmax.f32 %v408_v12, 0.0  ;;  %v578_v23 = vmax.f32 %v504_v13, 0.0 }
 0x121   :  { %v973_v24 = vpack.c.bf16 %v551_v16, %v551_v16  ;;  %v997_v25 = vpack.c.bf16 %v575_v17, %v575_v17  ;;  %v552_v26 = vmax.f32 %v400_v18, 0.0  ;;  %v576_v27 = vmax.f32 %v496_v19, 0.0 }
 0x122   :  { %810 = vst.msk [vmem:[#allocation7 + $0x38] sm:$0xf] %vm795_vm3, %v975_v20  ;;  %834 = vst.msk [vmem:[#allocation7 + $0x98] sm:$0xf] %vm795_vm3, %v999_v21  ;;  %v976_v28 = vpack.c.bf16 %v554_v22, %v554_v22  ;;  %v1000_v29 = vpack.c.bf16 %v578_v23, %v578_v23 }
 0x123   :  { %808 = vst.msk [vmem:[#allocation7 + $0x30] sm:$0xf] %vm795_vm3, %v973_v24  ;;  %832 = vst.msk [vmem:[#allocation7 + $0x90] sm:$0xf] %vm795_vm3, %v997_v25  ;;  %v974_v31 = vpack.c.bf16 %v552_v26, %v552_v26  ;;  %v998_v32 = vpack.c.bf16 %v576_v27, %v576_v27  ;;  %v1057_v33 = vpop.f32.mrb[16].mxu0  ;;  %v1081_v34 = vpop.f32.mrb[16].mxu1 }
 0x124   :  { %811 = vst.msk [vmem:[#allocation7 + $0x3c] sm:$0xf] %vm795_vm3, %v976_v28  ;;  %835 = vst.msk [vmem:[#allocation7 + $0x9c] sm:$0xf] %vm795_vm3, %v1000_v29  ;;  %v421_v35 = vadd.f32 %v1057_v33, %v1278_v30  ;;  %v517_v36 = vadd.f32 %v1081_v34, %v1278_v30  ;;  %v412_v37 = vpop.f32.mrb[17].mxu0  ;;  %v508_v38 = vpop.f32.mrb[17].mxu1 }
 0x125   :  { %809 = vst.msk [vmem:[#allocation7 + $0x34] sm:$0xf] %vm795_vm3, %v974_v31  ;;  %833 = vst.msk [vmem:[#allocation7 + $0x94] sm:$0xf] %vm795_vm3, %v998_v32  ;;  %v413_v39 = vadd.f32 %v1278_v30, %v412_v37  ;;  %v509_v40 = vadd.f32 %v1278_v30, %v508_v38  ;;  %v1058_v41 = vpop.f32.mrb[18].mxu0  ;;  %v1082_v42 = vpop.f32.mrb[18].mxu1 }
 0x126   :  { %v557_v43 = vmax.f32 %v421_v35, 0.0  ;;  %v581_v44 = vmax.f32 %v517_v36, 0.0  ;;  %v424_v45 = vadd.f32 %v1058_v41, %v1278_v30  ;;  %v520_v46 = vadd.f32 %v1082_v42, %v1278_v30  ;;  %v415_v47 = vpop.f32.mrb[19].mxu0  ;;  %v511_v48 = vpop.f32.mrb[19].mxu1 }
 0x127   :  { %v555_v49 = vmax.f32 %v413_v39, 0.0  ;;  %v579_v50 = vmax.f32 %v509_v40, 0.0  ;;  %v416_v51 = vadd.f32 %v1278_v30, %v415_v47  ;;  %v512_v52 = vadd.f32 %v1278_v30, %v511_v48 }
 0x128   :  { %v979_v53 = vpack.c.bf16 %v557_v43, %v557_v43  ;;  %v1003_v54 = vpack.c.bf16 %v581_v44, %v581_v44  ;;  %v558_v55 = vmax.f32 %v424_v45, 0.0  ;;  %v582_v56 = vmax.f32 %v520_v46, 0.0 }
 0x129   :  { %v977_v57 = vpack.c.bf16 %v555_v49, %v555_v49  ;;  %v1001_v58 = vpack.c.bf16 %v579_v50, %v579_v50  ;;  %v556_v59 = vmax.f32 %v416_v51, 0.0  ;;  %v580_v60 = vmax.f32 %v512_v52, 0.0 }
 0x12a   :  { %814 = vst.msk [vmem:[#allocation7 + $0x48] sm:$0xf] %vm795_vm3, %v979_v53  ;;  %838 = vst.msk [vmem:[#allocation7 + $0xa8] sm:$0xf] %vm795_vm3, %v1003_v54  ;;  %v980_v61 = vpack.c.bf16 %v558_v55, %v558_v55  ;;  %v1004_v62 = vpack.c.bf16 %v582_v56, %v582_v56 }
 0x12b   :  { %812 = vst.msk [vmem:[#allocation7 + $0x40] sm:$0xf] %vm795_vm3, %v977_v57  ;;  %836 = vst.msk [vmem:[#allocation7 + $0xa0] sm:$0xf] %vm795_vm3, %v1001_v58  ;;  %v978_v63 = vpack.c.bf16 %v556_v59, %v556_v59  ;;  %v1002_v0 = vpack.c.bf16 %v580_v60, %v580_v60  ;;  %v1061_v1 = vpop.f32.mrb[20].mxu0  ;;  %v1085_v2 = vpop.f32.mrb[20].mxu1 }
 0x12c   :  { %815 = vst.msk [vmem:[#allocation7 + $0x4c] sm:$0xf] %vm795_vm3, %v980_v61  ;;  %839 = vst.msk [vmem:[#allocation7 + $0xac] sm:$0xf] %vm795_vm3, %v1004_v62  ;;  %v437_v3 = vadd.f32 %v1061_v1, %v1278_v30  ;;  %v533_v4 = vadd.f32 %v1085_v2, %v1278_v30  ;;  %v428_v5 = vpop.f32.mrb[21].mxu0  ;;  %v524_v6 = vpop.f32.mrb[21].mxu1 }
 0x12d   :  { %813 = vst.msk [vmem:[#allocation7 + $0x44] sm:$0xf] %vm795_vm3, %v978_v63  ;;  %837 = vst.msk [vmem:[#allocation7 + $0xa4] sm:$0xf] %vm795_vm3, %v1002_v0  ;;  %v429_v7 = vadd.f32 %v1278_v30, %v428_v5  ;;  %v525_v8 = vadd.f32 %v1278_v30, %v524_v6  ;;  %v1062_v9 = vpop.f32.mrb[22].mxu0  ;;  %v1086_v10 = vpop.f32.mrb[22].mxu1 }
 0x12e   :  { %v561_v11 = vmax.f32 %v437_v3, 0.0  ;;  %v585_v12 = vmax.f32 %v533_v4, 0.0  ;;  %v440_v13 = vadd.f32 %v1062_v9, %v1278_v30  ;;  %v536_v14 = vadd.f32 %v1086_v10, %v1278_v30  ;;  %v431_v15 = vpop.f32.mrb[23].mxu0  ;;  %v527_v16 = vpop.f32.mrb[23].mxu1 }
 0x12f   :  { %v559_v17 = vmax.f32 %v429_v7, 0.0  ;;  %v583_v18 = vmax.f32 %v525_v8, 0.0  ;;  %v432_v19 = vadd.f32 %v1278_v30, %v431_v15  ;;  %v528_v20 = vadd.f32 %v1278_v30, %v527_v16 }
 0x130   :  { %v983_v21 = vpack.c.bf16 %v561_v11, %v561_v11  ;;  %v1007_v22 = vpack.c.bf16 %v585_v12, %v585_v12  ;;  %v562_v23 = vmax.f32 %v440_v13, 0.0  ;;  %v586_v24 = vmax.f32 %v536_v14, 0.0 }
 0x131   :  { %v981_v25 = vpack.c.bf16 %v559_v17, %v559_v17  ;;  %v1005_v26 = vpack.c.bf16 %v583_v18, %v583_v18  ;;  %v560_v27 = vmax.f32 %v432_v19, 0.0  ;;  %v584_v28 = vmax.f32 %v528_v20, 0.0 }
 0x132   :  { %818 = vst.msk [vmem:[#allocation7 + $0x58] sm:$0xf] %vm795_vm3, %v983_v21  ;;  %842 = vst.msk [vmem:[#allocation7 + $0xb8] sm:$0xf] %vm795_vm3, %v1007_v22  ;;  %v984_v29 = vpack.c.bf16 %v562_v23, %v562_v23  ;;  %v1008_v31 = vpack.c.bf16 %v586_v24, %v586_v24 }
 0x133   :  { %816 = vst.msk [vmem:[#allocation7 + $0x50] sm:$0xf] %vm795_vm3, %v981_v25  ;;  %840 = vst.msk [vmem:[#allocation7 + $0xb0] sm:$0xf] %vm795_vm3, %v1005_v26  ;;  %v982_v30 = vpack.c.bf16 %v560_v27, %v560_v27  ;;  %v1006_v32 = vpack.c.bf16 %v584_v28, %v584_v28 }
 0x134   :  { %819 = vst.msk [vmem:[#allocation7 + $0x5c] sm:$0xf] %vm795_vm3, %v984_v29  ;;  %843 = vst.msk [vmem:[#allocation7 + $0xbc] sm:$0xf] %vm795_vm3, %v1008_v31 }
 0x135   :  { %817 = vst.msk [vmem:[#allocation7 + $0x54] sm:$0xf] %vm795_vm3, %v982_v30  ;;  %841 = vst.msk [vmem:[#allocation7 + $0xb4] sm:$0xf] %vm795_vm3, %v1006_v32 }
 0x136   :  { %1178 = shalt.err (!%p1175_p6)
}
 0x137   :  { %s1179_s15 = scalar_lea.hbm %s1394_s3, 3072 }
 0x138   :  { %p1180_p7 = scmp.ne.s32.totalorder %s1394_s3, %s1179_s15  ;;  %p1183_p8 = scmp.lt.u32.totalorder %s1179_s15, %s1394_s3 }
 0x13a   :  { %p1185_p9 = pnand %p1183_p8, %p1180_p7 }
 0x13c   :  { %1188 = shalt.err (!%p1185_p9)
}
 0x13d   :  { %855 = dma.vmem_to_hbm [thread:$0]  %s850_s11, 3072, %s1394_s3, [#allocation4], %s1196_s22, %s1196_s22, %s1197_s23  }
 0x13e   :  { %1193 = dma.done.wait [#allocation4], 3072  }
 0x13f   :  { %1194 = vsyncadd [#allocation4], 4294964224 }
 0x140   :  { %859 = vsyncpa [#allocation3], 1 }
 0x141   :  { %860 = vsyncpa [#allocation6], 1 }
 0x142   :  { %861 = vsyncpa [#allocation4], 1 }

</bundles_post_ra>
